<compile_context>
chip_gen: v6e
topology: v6e:2x2x1
jax: 0.10.0
libtpu: 0.0.40
codegen_flags: <defaults>
</compile_context>

<pallas_src>
import numpy as np
import jax
import jax.numpy as jnp
from jax.experimental import pallas as pl
from jax.experimental.pallas import tpu as pltpu

ENTITY_TYPES = {'PERSON': 0, 'PROFESSION': 1, 'ORGANIZATION': 2, 'FAMILY': 3, 'LOCATION': 4}
RELATION_TYPES = {'WORKS_AS': 0, 'MEMBER_OF': 1, 'FOUNDED_BY': 2, 'SPOUSE': 3, 'PARENT_OF': 4,
                  'SIBLING': 5, 'PART_OF': 6, 'WORKPLACE': 7, 'RELATIVE': 8}
RELATION_TYPES_INV = {v: k for k, v in RELATION_TYPES.items()}

# Set to jnp.bfloat16 on v6e/v7x for ~2x MXU throughput + half weight DMA bytes
# (accumulation stays f32).  Default f32 keeps exact parity with the PyTorch ref.
MATMUL_DTYPE = jnp.float32


def _round_up(x, m):
    return ((x + m - 1) // m) * m


# ----------------------------- Pallas kernels ------------------------------

def _mlp_kernel(x_ref, w1_ref, b1_ref, w2_ref, b2_ref, o_ref):
    """Fused Linear -> ReLU -> Linear (dropout is identity in eval mode).
    Matmuls accumulate in f32; bias/ReLU epilogue in f32 (v5e has no bf16 VALU)."""
    h = jnp.dot(x_ref[...], w1_ref[...], preferred_element_type=jnp.float32) + b1_ref[...]
    h = jnp.maximum(h, 0.0)
    o_ref[...] = (jnp.dot(h.astype(w2_ref.dtype), w2_ref[...],
                          preferred_element_type=jnp.float32) + b2_ref[...]).astype(o_ref.dtype)


def mlp_pallas(x, w1, b1, w2, b2, tile_m=128):
    """Generic 2-layer MLP head.  Pads M to tile_m, K and N to 128 lanes
    (zero padding => identical math), slices the result back to [M, N]."""
    M, K = x.shape
    Hid = w1.shape[1]
    N = w2.shape[1]
    Kp = _round_up(K, 128)
    Np = _round_up(N, 128)
    Mp = _round_up(max(M, 1), tile_m)
    dt = MATMUL_DTYPE

    xp = jnp.zeros((Mp, Kp), dt).at[:M, :K].set(x.astype(dt))
    w1p = jnp.zeros((Kp, Hid), dt).at[:K, :].set(w1.astype(dt))
    b1p = b1.astype(jnp.float32)                                   # [1, Hid]
    w2p = jnp.zeros((Hid, Np), dt).at[:, :N].set(w2.astype(dt))
    b2p = jnp.zeros((1, Np), jnp.float32).at[:, :N].set(b2.astype(jnp.float32))

    out = pl.pallas_call(
        _mlp_kernel,
        out_shape=jax.ShapeDtypeStruct((Mp, Np), jnp.float32),
        grid_spec=pltpu.PrefetchScalarGridSpec(
            num_scalar_prefetch=0,
            grid=(Mp // tile_m,),
            in_specs=[pl.BlockSpec((tile_m, Kp), lambda i: (i, 0)),
                      # constant block index => weights stay resident, no re-DMA
                      pl.BlockSpec((Kp, Hid), lambda i: (0, 0)),
                      pl.BlockSpec((1, Hid), lambda i: (0, 0)),
                      pl.BlockSpec((Hid, Np), lambda i: (0, 0)),
                      pl.BlockSpec((1, Np), lambda i: (0, 0))],
            out_specs=pl.BlockSpec((tile_m, Np), lambda i: (i, 0))),
        compiler_params=pltpu.CompilerParams(
            dimension_semantics=("parallel",)),                    # megacore on v7x
    )(xp, w1p, b1p, w2p, b2p)
    return out[:M, :N]


def ner_mlp(x, w1, b1, w2, b2):
    """ner_classifier head: x [M, H] -> logits [M, num_ner_labels]."""
    return mlp_pallas(x, w1, b1, w2, b2, tile_m=128)


def rel_mlp(r, w1, b1, w2, b2):
    """rel_classifier head: r [P, 2*64+32+H] -> score [P]."""
    return mlp_pallas(r, w1, b1, w2, b2, tile_m=128)[:, 0]


def _pool_kernel(tok_ref, len_ref, o_ref):
    """Entity attention pooling for ALL entities in one shot (mirrors
    _encode_entities inner math): scores = tok @ mean(tok); w = softmax(scores);
    out = sum(tok * w).  Mask is built in-kernel from entity lengths."""
    tok = tok_ref[...]                                             # [E, L, Hp]
    lens = len_ref[...]                                            # [E, 1, 1]
    E, L, Hp = tok.shape
    pos = jax.lax.broadcasted_iota(jnp.float32, (E, L, 1), 1)
    m = (pos < lens).astype(jnp.float32)                           # [E, L, 1]
    cnt = jnp.maximum(jnp.sum(m, axis=1, keepdims=True), 1.0)      # [E, 1, 1]
    mean = jnp.sum(tok * m, axis=1, keepdims=True) / cnt           # [E, 1, Hp]
    scores = jnp.sum(tok * mean, axis=2, keepdims=True)            # [E, L, 1]
    scores = jnp.where(m > 0, scores, -1e30)
    mx = jnp.max(scores, axis=1, keepdims=True)                    # [E, 1, 1]
    ex = jnp.exp(scores - mx) * m
    denom = jnp.maximum(jnp.sum(ex, axis=1, keepdims=True), 1e-30)
    w = ex / denom
    o_ref[...] = jnp.sum(tok * w, axis=1)                          # [E, Hp]


def attention_pool(tok, lens):
    """tok [E, Lmax, H] (on device), lens [E] -> pooled [E, H].
    Single grid step for all entities; E/L padded to 8, H padded to 128 lanes."""
    E, L, H = tok.shape
    Ep = _round_up(E, 8)
    Lp = _round_up(L, 8)
    Hp = _round_up(H, 128)
    tokp = jnp.zeros((Ep, Lp, Hp), jnp.float32).at[:E, :L, :H].set(tok.astype(jnp.float32))
    lensp = jnp.zeros((Ep, 1, 1), jnp.float32).at[:E, 0, 0].set(lens.astype(jnp.float32))
    out = pl.pallas_call(
        _pool_kernel,
        out_shape=jax.ShapeDtypeStruct((Ep, Hp), jnp.float32),
        grid_spec=pltpu.PrefetchScalarGridSpec(
            num_scalar_prefetch=0,
            grid=(1,),
            in_specs=[pl.BlockSpec((Ep, Lp, Hp), lambda i: (0, 0, 0)),
                      pl.BlockSpec((Ep, 1, 1), lambda i: (0, 0, 0))],
            out_specs=pl.BlockSpec((Ep, Hp), lambda i: (0, 0))),
    )(tokp, lensp)
    return out[:E, :H]


# ----------------------------- plain-JAX glue -------------------------------

def layer_norm(x, gamma, beta, eps=1e-5):
    mu = x.mean(-1, keepdims=True)
    var = ((x - mu) ** 2).mean(-1, keepdims=True)
    return (x - mu) / jnp.sqrt(var + eps) * gamma + beta


def dense_gat(x, C, W, a_src, a_dst, bias, heads, out_dim, concat, negative_slope=0.2):
    """GATConv semantics on a dense edge-count matrix C (C[i, j] = #edges j->i).
    Duplicate edges are weighted by count to match PyG's multiset softmax."""
    N = x.shape[0]
    xw = (x @ W).reshape(N, heads, out_dim)                   # [N, heads, D]
    s = jnp.sum(xw * a_src[None], axis=-1)                    # [N, heads] source term
    d = jnp.sum(xw * a_dst[None], axis=-1)                    # [N, heads] target term
    e = d[:, None, :] + s[None, :, :]                         # e[i, j, h] for edge j->i
    e = jnp.where(e > 0, e, negative_slope * e)               # LeakyReLU
    Cm = C[:, :, None]
    e = jnp.where(Cm > 0, e, -1e30)
    e = e - jnp.max(e, axis=1, keepdims=True)
    w = jnp.where(Cm > 0, Cm * jnp.exp(e), 0.0)
    alpha = w / jnp.sum(w, axis=1, keepdims=True)
    out = jnp.einsum('ijh,jhd->ihd', alpha, xw)
    out = out.reshape(N, heads * out_dim) if concat else out.mean(axis=1)
    return out + bias


def build_knn_counts_device(x, k=5):
    """On-device reproduction of _build_knn_graph + reverse edges + self loops as
    an edge-count matrix C[dst, src] (no device->host round trip)."""
    N = x.shape[0]
    xn = x / jnp.linalg.norm(x, axis=1, keepdims=True)
    sim = xn @ xn.T
    kk = min(k + 1, N)
    _, idx = jax.lax.top_k(sim, kk)                           # includes self (sim=1)
    A = jnp.sum(jax.nn.one_hot(idx, N, dtype=jnp.float32), axis=1)   # [N, N] 0/1
    eye = jnp.eye(N, dtype=jnp.float32)
    A = A * (1.0 - eye)                                       # drop self edges
    return A + A.T + eye                                      # edges + reversed + loops


def xavier_uniform(key, shape):
    limit = np.sqrt(6.0 / (shape[0] + shape[1]))
    return jax.random.uniform(key, shape, jnp.float32, -limit, limit)


# ------------------------------- the model ----------------------------------

class NERRelationModelPallas:
    def __init__(self, key, hidden_size=32, vocab_size=50,
                 entity_types=tuple(ENTITY_TYPES), relation_types=tuple(RELATION_TYPES)):
        self.hidden = hidden_size
        self.entity_types = list(entity_types)
        self.relation_types = list(relation_types)
        self.entity_type_to_idx = {t: i for i, t in enumerate(self.entity_types)}
        self.num_ner_labels = len(ENTITY_TYPES) * 2 + 1            # 11
        self.num_rel_labels = len(RELATION_TYPES)                  # 9

        ks = jax.random.split(key, 20)
        H = hidden_size
        # TODO(synk): BERT encoder has no clean Pallas equivalent; a deterministic
        # embedding table stands in for bert(...).last_hidden_state.
        self.embed_table = jax.random.normal(ks[0], (vocab_size, H), jnp.float32) * 0.02

        # ner_classifier: Linear(H,256) -> ReLU -> Dropout(eval=id) -> Linear(256, 11)
        self.ner_w1 = jax.random.normal(ks[1], (H, 256), jnp.float32) * 0.02
        self.ner_b1 = jnp.zeros((1, 256), jnp.float32)
        self.ner_w2 = jax.random.normal(ks[2], (256, self.num_ner_labels), jnp.float32) * 0.02
        self.ner_b2 = jnp.zeros((1, self.num_ner_labels), jnp.float32)

        # entity / relation type embeddings (entity emb sized to hidden so that
        # pooled + type_emb is shape-consistent; original uses 768 == bert hidden)
        self.entity_type_emb = jax.random.normal(ks[3], (len(self.entity_types), H), jnp.float32) * 0.02
        self.rel_type_emb = jax.random.normal(ks[4], (self.num_rel_labels, 32), jnp.float32) * 0.02

        # GAT1: H -> 128 x 4 heads (concat), GAT2: 512 -> 64, 1 head (mean)
        self.g1_w = jax.random.normal(ks[5], (H, 4 * 128), jnp.float32) * 0.02
        self.g1_asrc = jax.random.normal(ks[6], (4, 128), jnp.float32) * 0.02
        self.g1_adst = jax.random.normal(ks[7], (4, 128), jnp.float32) * 0.02
        self.g1_b = jnp.zeros((512,), jnp.float32)
        self.n1_g = jnp.ones((512,), jnp.float32)
        self.n1_b = jnp.zeros((512,), jnp.float32)
        self.g2_w = jax.random.normal(ks[8], (512, 64), jnp.float32) * 0.02
        self.g2_asrc = jax.random.normal(ks[9], (1, 64), jnp.float32) * 0.02
        self.g2_adst = jax.random.normal(ks[10], (1, 64), jnp.float32) * 0.02
        self.g2_b = jnp.zeros((64,), jnp.float32)
        self.n2_g = jnp.ones((64,), jnp.float32)
        self.n2_b = jnp.zeros((64,), jnp.float32)

        # rel_classifier: Linear(64*2+32+H, 256) -> ReLU -> Dropout(eval=id) -> Linear(256,1)
        rel_in = 64 * 2 + 32 + H
        self.rel_w1 = xavier_uniform(ks[11], (rel_in, 256))
        self.rel_b1 = jnp.zeros((1, 256), jnp.float32)
        self.rel_w2 = xavier_uniform(ks[12], (256, 1))
        self.rel_b2 = jnp.zeros((1, 1), jnp.float32)

    # -------------------------------------------------------------------
    def forward(self, input_ids, attention_mask, ner_labels=None, rel_data=None):
        # TODO(synk): attention_mask would be consumed by the (absent) BERT encoder.
        B, S = input_ids.shape
        sequence_output = self.embed_table[input_ids]                 # [B, S, H]
        cls_token = sequence_output[:, 0, :]                          # [B, H]

        ner_logits = ner_mlp(sequence_output.reshape(B * S, self.hidden),
                             self.ner_w1, self.ner_b1, self.ner_w2, self.ner_b2
                             ).reshape(B, S, self.num_ner_labels)
        # TODO(synk): CRF log-likelihood (ner_labels path) has no clean Pallas equivalent; skipped.

        rel_logits, rel_labels, rel_probs = {}, {}, {}
        if rel_data:
            # ---- Phase 1: host-side index tables for ALL entities of ALL samples
            # (only Python ints from the data dicts; activations never leave device).
            sample_entities, Lmax = [], 1
            for sample in rel_data:
                entities = [e for e in sample['entities'] if 'start' in e and 'end' in e]
                if len(entities) < 2:
                    sample_entities.append(None)
                    continue
                sample_entities.append(entities)
                Lmax = max(Lmax, max(e['end'] - e['start'] + 1 for e in entities))

            flat_idx, flat_lens, flat_types, offsets = [], [], [], []
            for batch_idx, entities in enumerate(sample_entities):
                if entities is None:
                    offsets.append(None)
                    continue
                start_off, id_map = len(flat_idx), {}
                for i, e in enumerate(entities):
                    s, t = e['start'], e['end']
                    L = t - s + 1
                    row = np.zeros((Lmax,), np.int32)
                    row[:L] = batch_idx * S + np.arange(s, t + 1, dtype=np.int32)
                    flat_idx.append(row)
                    flat_lens.append(float(L))
                    flat_types.append(self.entity_type_to_idx.get(e['type'], 0))
                    id_map[e['id']] = i
                offsets.append((start_off, len(entities), id_map))

            all_vecs, all_keys = [], []
            if flat_idx:
                # ---- Phase 2: ONE gather + ONE Pallas attention-pool call for
                # every entity in the batch.
                idx_all = jnp.asarray(np.stack(flat_idx))                 # [E_total, Lmax]
                lens_all = jnp.asarray(np.array(flat_lens, np.float32))   # [E_total]
                types_all = jnp.asarray(np.array(flat_types, np.int32))
                flat_seq = sequence_output.reshape(B * S, self.hidden)
                tok_all = jnp.take(flat_seq, idx_all, axis=0)             # [E_total, Lmax, H]
                pooled_all = attention_pool(tok_all, lens_all)            # Pallas, one call
                ent_all = pooled_all + self.entity_type_emb[types_all]

                # ---- Phase 3: per-sample kNN graph + GAT (tiny, data-dependent
                # sparse graph) — on-device JAX glue — and relation-vector assembly.
                for batch_idx, off in enumerate(offsets):
                    if off is None:
                        continue
                    start_off, cnt, id_map = off
                    x = self._gat_stack(ent_all[start_off:start_off + cnt])
                    pair_rows = self._pair_rows(rel_data[batch_idx], id_map)
                    if not pair_rows:
                        continue
                    i1s = jnp.asarray([p[0] for p in pair_rows], jnp.int32)
                    i2s = jnp.asarray([p[1] for p in pair_rows], jnp.int32)
                    lids = jnp.asarray([p[2] for p in pair_rows], jnp.int32)
                    P = len(pair_rows)
                    cls_vec = cls_token[batch_idx]
                    vecs = jnp.concatenate(
                        [x[i1s], x[i2s], self.rel_type_emb[lids],
                         jnp.broadcast_to(cls_vec[None, :], (P, self.hidden))], axis=1)
                    all_vecs.append(vecs)
                    all_keys.extend([p[3] for p in pair_rows])

            if all_vecs:
                R = jnp.concatenate(all_vecs, axis=0)                     # [P_total, F]
                scores = rel_mlp(R, self.rel_w1, self.rel_b1,
                                 self.rel_w2, self.rel_b2)                # Pallas, one call
                probs = jax.nn.sigmoid(scores)                            # one batched sigmoid
                for key, sc, pr in zip(all_keys, scores, probs):
                    rel_logits.setdefault(key, []).append(sc)
                    rel_labels.setdefault(key, []).append(1.0)
                    rel_probs.setdefault(key, []).append((pr, 1.0))
        # TODO(synk): training-time negative sampling + BCEWithLogits relation loss
        # not implemented (this is the eval forward path).
        return {'ner_logits': ner_logits, 'rel_logits': rel_logits,
                'rel_labels': rel_labels, 'rel_probs': rel_probs, 'loss': None}

    # -------------------------------------------------------------------
    def _gat_stack(self, x):
        C = build_knn_counts_device(x, k=5)
        x = dense_gat(x, C, self.g1_w, self.g1_asrc, self.g1_adst, self.g1_b, 4, 128, True)
        x = jax.nn.elu(layer_norm(x, self.n1_g, self.n1_b))
        x = dense_gat(x, C, self.g2_w, self.g2_asrc, self.g2_adst, self.g2_b, 1, 64, False)
        x = jax.nn.elu(layer_norm(x, self.n2_g, self.n2_b))
        return x

    def _pair_rows(self, sample, id_map):
        pair_rows = []                                   # (idx1, idx2, label_idx, key)
        for (i1, i2), label in zip(sample['pairs'], sample['labels']):
            e1, e2 = f'T{i1}', f'T{i2}'
            if e1 not in id_map or e2 not in id_map:
                continue
            idx1, idx2 = id_map[e1], id_map[e2]
            label_idx = int(label)
            if RELATION_TYPES_INV[label_idx] == 'FOUNDED_BY':
                idx1, idx2 = idx2, idx1
            pair_rows.append((idx1, idx2, label_idx, label))
        return pair_rows


# --------------------------------- main --------------------------------------

if __name__ == "__main__":
    key = jax.random.PRNGKey(0)
    model = NERRelationModelPallas(key, hidden_size=32, vocab_size=50)

    B, S = 2, 8
    k1, _ = jax.random.split(jax.random.PRNGKey(0))
    input_ids = jax.random.randint(k1, (B, S), 0, 50)
    attention_mask = jnp.ones((B, S), jnp.int32)

    rel_data = [
        {'entities': [
            {'id': 'T1', 'start': 1, 'end': 2, 'type': 'PERSON'},
            {'id': 'T2', 'start': 3, 'end': 4, 'type': 'PROFESSION'},
            {'id': 'T3', 'start': 5, 'end': 6, 'type': 'ORGANIZATION'}],
         'pairs': [(1, 2), (1, 3)],
         'labels': [0, 7]},                       # WORKS_AS, WORKPLACE
        {'entities': [
            {'id': 'T1', 'start': 0, 'end': 1, 'type': 'ORGANIZATION'},
            {'id': 'T2', 'start': 4, 'end': 6, 'type': 'PERSON'}],
         'pairs': [(1, 2)],
         'labels': [2]},                          # FOUNDED_BY (indices swapped)
    ]

    out = model.forward(input_ids, attention_mask, rel_data=rel_data)
    jax.block_until_ready(out['ner_logits'])
    jax.block_until_ready(out['rel_logits'])
    jax.block_until_ready(out['rel_probs'])
    assert out['ner_logits'].shape == (B, S, model.num_ner_labels)
    assert not bool(jnp.any(jnp.isnan(out['ner_logits'])))
    assert len(out['rel_logits']) > 0
    for key_, vals in out['rel_logits'].items():
        for v in vals:
            assert not bool(jnp.isnan(v))
    print("KERNEL_OK")
</pallas_src>

<mosaic_0001>
module attributes {stable_mosaic.version = 11 : i64} {
  func.func @_mlp_kernel(%arg0: i32, %arg1: memref<128x128xf32, #tpu.memory_space<vmem>>, %arg2: memref<128x256xf32, #tpu.memory_space<vmem>>, %arg3: memref<1x256xf32, #tpu.memory_space<vmem>>, %arg4: memref<256x128xf32, #tpu.memory_space<vmem>>, %arg5: memref<1x128xf32, #tpu.memory_space<vmem>>, %arg6: memref<128x128xf32, #tpu.memory_space<vmem>>) attributes {dimension_semantics = [#tpu.dimension_semantics<parallel>], iteration_bounds = array<i64: 1>, scalar_prefetch = 0 : i64, scratch_operands = 0 : i64, tpu.core_type = #tpu.core_type<tc>, window_params = [{transform_indices = @transform_0, window_bounds = array<i64: 128, 128>}, {pipeline_mode = #tpu.pipeline_mode<synchronous>, transform_indices = @transform_1, window_bounds = array<i64: 128, 256>}, {pipeline_mode = #tpu.pipeline_mode<synchronous>, transform_indices = @transform_2, window_bounds = array<i64: 1, 256>}, {pipeline_mode = #tpu.pipeline_mode<synchronous>, transform_indices = @transform_3, window_bounds = array<i64: 256, 128>}, {pipeline_mode = #tpu.pipeline_mode<synchronous>, transform_indices = @transform_4, window_bounds = array<i64: 1, 128>}, {transform_indices = @transform_5, window_bounds = array<i64: 128, 128>}]} {
    %c0 = arith.constant 0 : index
    %c0_0 = arith.constant 0 : index
    %0 = vector.load %arg1[%c0, %c0_0] : memref<128x128xf32, #tpu.memory_space<vmem>>, vector<128x128xf32>
    %c0_1 = arith.constant 0 : index
    %c0_2 = arith.constant 0 : index
    %1 = vector.load %arg2[%c0_1, %c0_2] : memref<128x256xf32, #tpu.memory_space<vmem>>, vector<128x256xf32>
    %cst = arith.constant dense<0.000000e+00> : vector<128x256xf32>
    %2 = tpu.matmul %0, %1, %cst {dimension_numbers = #tpu.dot_dimension_numbers<[1], [0], [0], [1], [0, 0, 1, 1], [], []>} : vector<128x128xf32>, vector<128x256xf32>, vector<128x256xf32> -> vector<128x256xf32>
    %c0_3 = arith.constant 0 : index
    %c0_4 = arith.constant 0 : index
    %3 = vector.load %arg3[%c0_3, %c0_4] : memref<1x256xf32, #tpu.memory_space<vmem>>, vector<1x256xf32>
    %4 = vector.broadcast %3 : vector<1x256xf32> to vector<128x256xf32>
    %5 = arith.addf %2, %4 : vector<128x256xf32>
    %cst_5 = arith.constant 0.000000e+00 : f32
    %6 = vector.broadcast %cst_5 : f32 to vector<128x256xf32>
    %7 = arith.maximumf %5, %6 : vector<128x256xf32>
    %c0_6 = arith.constant 0 : index
    %c0_7 = arith.constant 0 : index
    %8 = vector.load %arg4[%c0_6, %c0_7] : memref<256x128xf32, #tpu.memory_space<vmem>>, vector<256x128xf32>
    %cst_8 = arith.constant dense<0.000000e+00> : vector<128x128xf32>
    %9 = tpu.matmul %7, %8, %cst_8 {dimension_numbers = #tpu.dot_dimension_numbers<[1], [0], [0], [1], [0, 0, 1, 1], [], []>} : vector<128x256xf32>, vector<256x128xf32>, vector<128x128xf32> -> vector<128x128xf32>
    %c0_9 = arith.constant 0 : index
    %c0_10 = arith.constant 0 : index
    %10 = vector.load %arg5[%c0_9, %c0_10] : memref<1x128xf32, #tpu.memory_space<vmem>>, vector<1x128xf32>
    %11 = vector.broadcast %10 : vector<1x128xf32> to vector<128x128xf32>
    %12 = arith.addf %9, %11 : vector<128x128xf32>
    %c0_11 = arith.constant 0 : index
    %c0_12 = arith.constant 0 : index
    %13 = vector.load %arg6[%c0_11, %c0_12] : memref<128x128xf32, #tpu.memory_space<vmem>>, vector<128x128xf32>
    tpu.vector_store %arg6[%c0_11, %c0_12], %12 {strides = array<i32>} : memref<128x128xf32, #tpu.memory_space<vmem>>, vector<128x128xf32>,
    return
  }
  func.func @transform_0(%arg0: i32) -> (i32, i32) {
    %c0_i32 = arith.constant 0 : i32
    %c0_i32_0 = arith.constant 0 : i32
    return %arg0, %c0_i32 : i32, i32
  }
  func.func @transform_1(%arg0: i32) -> (i32, i32) {
    %c0_i32 = arith.constant 0 : i32
    %c0_i32_0 = arith.constant 0 : i32
    %c0_i32_1 = arith.constant 0 : i32
    return %c0_i32, %c0_i32_0 : i32, i32
  }
  func.func @transform_2(%arg0: i32) -> (i32, i32) {
    %c0_i32 = arith.constant 0 : i32
    %c0_i32_0 = arith.constant 0 : i32
    %c0_i32_1 = arith.constant 0 : i32
    return %c0_i32, %c0_i32_0 : i32, i32
  }
  func.func @transform_3(%arg0: i32) -> (i32, i32) {
    %c0_i32 = arith.constant 0 : i32
    %c0_i32_0 = arith.constant 0 : i32
    %c0_i32_1 = arith.constant 0 : i32
    return %c0_i32, %c0_i32_0 : i32, i32
  }
  func.func @transform_4(%arg0: i32) -> (i32, i32) {
    %c0_i32 = arith.constant 0 : i32
    %c0_i32_0 = arith.constant 0 : i32
    %c0_i32_1 = arith.constant 0 : i32
    return %c0_i32, %c0_i32_0 : i32, i32
  }
  func.func @transform_5(%arg0: i32) -> (i32, i32) {
    %c0_i32 = arith.constant 0 : i32
    %c0_i32_0 = arith.constant 0 : i32
    return %arg0, %c0_i32 : i32, i32
  }
}

</mosaic_0001>

<bundles_post_ra>
// kernel: tpu_custom_call.1
= control target key start
LH: loop header
LB: loop body
LE: loop exit
PB: predicated region body
PF: predicated region fallthrough
CT: control target
= control target key end

     0   :  { %10 = vsyncpa [#allocation3], 0  ;;  %s845_s0 = inlined_call_operand.hbm [shape: f32[128,128], index: 0, kind: input, shape index: {}]   ;;  %s846_s1 = inlined_call_operand.hbm [shape: f32[128,256], index: 1, kind: input, shape index: {}]   ;;  %s847_s2 = inlined_call_operand.vmem [shape: f32[1,256], index: 2, kind: input, shape index: {}]   ;;  %s848_s3 = inlined_call_operand.hbm [shape: f32[256,128], index: 3, kind: input, shape index: {}]   ;;  %s849_s4 = inlined_call_operand.vmem [shape: f32[1,128], index: 4, kind: input, shape index: {}]   ;;  %s850_s5 = inlined_call_operand.hbm [shape: f32[128,128], index: 5, kind: output, shape index: {}]  }
   0x1   :  { %11 = vsyncpa [#allocation6], 0 }
   0x2   :  { %12 = vsyncpa [#allocation4], 0  ;;  %s709_s18 = smov [#allocation5]  }
   0x3   :  { %s30_s19 = sshll.u32 %s709_s18, 4  ;;  %s31_s19 = int_to_ptr.vmem [resolvable:$true] %s30_s19 }
   0x4   :  { %s631_s20 = scalar_lea.vmem %s31_s19, 4096  ;;  %p636_p1 = scmp.lt.s32.totalorder %s31_s19, %s31_s19 }
   0x5   :  { %p632_p0 = scmp.ne.s32.totalorder %s31_s19, %s631_s20  ;;  %p637_p2 = scmp.lt.s32.totalorder %s631_s20, %s631_s20 }
   0x7   :  { %p638_p3 = por %p637_p2, %p636_p1 }
   0x9   :  { %p639_p4 = pnand %p638_p3, %p632_p0 }
   0xb   :  { %642 = shalt.err (!%p639_p4)
}
   0xc   :  { %s710_s21 = smov 256   ;;  %s711_s22 = smov 16  }
   0xd   :  { %36 = dma.hbm_to_vmem [thread:$0]  %s846_s1, 4096, %s31_s19, [#allocation6], %s710_s21, %s710_s21, %s711_s22  }
   0xe   :  { %s712_s25 = smov [#allocation2]  }
   0xf   :  { %s18_s26 = sshll.u32 %s712_s25, 4  ;;  %s19_s26 = int_to_ptr.vmem [resolvable:$true] %s18_s26 }
  0x10   :  { %s651_s27 = scalar_lea.vmem %s19_s26, 2048  ;;  %p656_p6 = scmp.lt.s32.totalorder %s19_s26, %s19_s26 }
  0x11   :  { %p652_p5 = scmp.ne.s32.totalorder %s19_s26, %s651_s27  ;;  %p657_p7 = scmp.lt.s32.totalorder %s651_s27, %s651_s27 }
  0x13   :  { %p658_p8 = por %p657_p7, %p656_p6 }
  0x15   :  { %p659_p9 = pnand %p658_p8, %p652_p5 }
  0x17   :  { %662 = shalt.err (!%p659_p9)
}
  0x18   :  { %s713_s28 = smov 128   ;;  %s714_s29 = smov 8  }
  0x19   :  { %24 = dma.hbm_to_vmem [thread:$0]  %s845_s0, 2048, %s19_s26, [#allocation3], %s713_s28, %s713_s28, %s714_s29  }
  0x1a   :  { %s715_s1 = smov [#allocation7]  }
  0x1b   :  { %s44_s7 = sshll.u32 %s715_s1, 4  ;;  %s45_s7 = int_to_ptr.vmem [resolvable:$true] %s44_s7 }
  0x1c   :  { %s671_s8 = scalar_lea.vmem %s45_s7, 4096  ;;  %p676_p11 = scmp.lt.s32.totalorder %s45_s7, %s45_s7 }
  0x1d   :  { %p672_p10 = scmp.ne.s32.totalorder %s45_s7, %s671_s8  ;;  %p677_p12 = scmp.lt.s32.totalorder %s671_s8, %s671_s8 }
  0x1f   :  { %p678_p13 = por %p677_p12, %p676_p11 }
  0x21   :  { %p679_p0 = pnand %p678_p13, %p672_p10 }
  0x23   :  { %682 = shalt.err (!%p679_p0)
}
  0x24   :  { %50 = dma.hbm_to_vmem [thread:$0]  %s848_s3, 4096, %s45_s7, [#allocation6], %s713_s28, %s713_s28, %s714_s29  }
  0x25   :  { %703 = dma.done.wait [#allocation3], 2048  }
  0x26   :  { %704 = vsyncadd [#allocation3], 4294965248 }
  0x27   :  { %705 = dma.done.wait [#allocation6], 8192  }
  0x28   :  { %706 = vsyncadd [#allocation6], 4294959104  ;;  %v716_v0 = vmov 0.0   ;;  %v109_v1 = vld [vmem:[#allocation5 + $0xf8] sm:$0xff]  ;;  %v108_v2 = vld [vmem:[#allocation5 + $0xf0] sm:$0xff] }
  0x29   :  { %186 = vmatprep.mubr.f32.mxu0 %v716_v0  ;;  %v107_v3 = vld [vmem:[#allocation5 + $0xe8] sm:$0xff]  ;;  %122 = vmatprep.subr.mxu0 %v109_v1  ;;  %v106_v4 = vld [vmem:[#allocation5 + $0xe0] sm:$0xff]  ;;  %v105_v5 = vld [vmem:[#allocation5 + $0xd8] sm:$0xff] }
  0x2a   :  { %123 = vmatpush1.msra.mxu0 %v108_v2  ;;  %v104_v6 = vld [vmem:[#allocation5 + $0xd0] sm:$0xff]  ;;  %v103_v7 = vld [vmem:[#allocation5 + $0xc8] sm:$0xff]  ;;  %v102_v8 = vld [vmem:[#allocation5 + $0xc0] sm:$0xff] }
  0x2b   :  { %124 = vmatprep.subr.mxu0 %v107_v3  ;;  %v101_v9 = vld [vmem:[#allocation5 + $0xb8] sm:$0xff]  ;;  %v100_v10 = vld [vmem:[#allocation5 + $0xb0] sm:$0xff]  ;;  %v99_v11 = vld [vmem:[#allocation5 + $0xa8] sm:$0xff] }
  0x2c   :  { %125 = vmatpush1.msra.mxu0 %v106_v4  ;;  %v98_v12 = vld [vmem:[#allocation5 + $0xa0] sm:$0xff]  ;;  %v97_v13 = vld [vmem:[#allocation5 + $0x98] sm:$0xff]  ;;  %v96_v14 = vld [vmem:[#allocation5 + $0x90] sm:$0xff] }
  0x2d   :  { %126 = vmatprep.subr.mxu0 %v105_v5  ;;  %v95_v15 = vld [vmem:[#allocation5 + $0x88] sm:$0xff]  ;;  %v94_v16 = vld [vmem:[#allocation5 + $0x80] sm:$0xff]  ;;  %v93_v17 = vld [vmem:[#allocation5 + $0x78] sm:$0xff] }
  0x2e   :  { %127 = vmatpush1.msra.mxu0 %v104_v6  ;;  %v92_v18 = vld [vmem:[#allocation5 + $0x70] sm:$0xff]  ;;  %v91_v19 = vld [vmem:[#allocation5 + $0x68] sm:$0xff]  ;;  %v346_v20 = vld [vmem:[#allocation7 + $0xf8] sm:$0xff] }
  0x2f   :  { %128 = vmatprep.subr.mxu0 %v103_v7  ;;  %v330_v21 = vld [vmem:[#allocation7 + $0x78] sm:$0xff]  ;;  %v345_v22 = vld [vmem:[#allocation7 + $0xf0] sm:$0xff]  ;;  %v90_v23 = vld [vmem:[#allocation5 + $0x60] sm:$0xff]  ;;  %534 = vmatprep.subr.mxu1 %v346_v20 }
  0x30   :  { %129 = vmatpush1.msra.mxu0 %v102_v8  ;;  %v329_v24 = vld [vmem:[#allocation7 + $0x70] sm:$0xff]  ;;  %v89_v25 = vld [vmem:[#allocation5 + $0x58] sm:$0xff]  ;;  %535 = vmatpush3.msra.mxu1 %v330_v21  ;;  %v344_v26 = vld [vmem:[#allocation7 + $0xe8] sm:$0xff] }
  0x31   :  { %130 = vmatprep.subr.mxu0 %v101_v9  ;;  %v88_v27 = vld [vmem:[#allocation5 + $0x50] sm:$0xff]  ;;  %536 = vmatprep.subr.mxu1 %v345_v22  ;;  %v328_v28 = vld [vmem:[#allocation7 + $0x68] sm:$0xff]  ;;  %v343_v30 = vld [vmem:[#allocation7 + $0xe0] sm:$0xff] }
  0x32   :  { %131 = vmatpush1.msra.mxu0 %v100_v10  ;;  %v87_v29 = vld [vmem:[#allocation5 + $0x48] sm:$0xff]  ;;  %537 = vmatpush3.msra.mxu1 %v329_v24  ;;  %v86_v31 = vld [vmem:[#allocation5 + $0x40] sm:$0xff]  ;;  %v85_v33 = vld [vmem:[#allocation5 + $0x38] sm:$0xff] }
  0x33   :  { %132 = vmatprep.subr.mxu0 %v99_v11  ;;  %538 = vmatprep.subr.mxu1 %v344_v26  ;;  %v327_v32 = vld [vmem:[#allocation7 + $0x60] sm:$0xff]  ;;  %v342_v34 = vld [vmem:[#allocation7 + $0xd8] sm:$0xff]  ;;  %v84_v35 = vld [vmem:[#allocation5 + $0x30] sm:$0xff] }
  0x34   :  { %133 = vmatpush1.msra.mxu0 %v98_v12  ;;  %539 = vmatpush3.msra.mxu1 %v328_v28  ;;  %v326_v36 = vld [vmem:[#allocation7 + $0x58] sm:$0xff]  ;;  %v83_v37 = vld [vmem:[#allocation5 + $0x28] sm:$0xff]  ;;  %v341_v38 = vld [vmem:[#allocation7 + $0xd0] sm:$0xff] }
  0x35   :  { %134 = vmatprep.subr.mxu0 %v97_v13  ;;  %540 = vmatprep.subr.mxu1 %v343_v30  ;;  %v82_v39 = vld [vmem:[#allocation5 + $0x20] sm:$0xff]  ;;  %v325_v40 = vld [vmem:[#allocation7 + $0x50] sm:$0xff]  ;;  %v81_v41 = vld [vmem:[#allocation5 + $0x18] sm:$0xff] }
  0x36   :  { %135 = vmatpush1.msra.mxu0 %v96_v14  ;;  %541 = vmatpush3.msra.mxu1 %v327_v32  ;;  %v340_v42 = vld [vmem:[#allocation7 + $0xc8] sm:$0xff]  ;;  %v80_v43 = vld [vmem:[#allocation5 + $0x10] sm:$0xff]  ;;  %v339_v46 = vld [vmem:[#allocation7 + $0xc0] sm:$0xff] }
  0x37   :  { %136 = vmatprep.subr.mxu0 %v95_v15  ;;  %542 = vmatprep.subr.mxu1 %v342_v34  ;;  %v324_v44 = vld [vmem:[#allocation7 + $0x48] sm:$0xff]  ;;  %v78_v47 = vld [vmem:[#allocation5] sm:$0xff]  ;;  %v338_v50 = vld [vmem:[#allocation7 + $0xb8] sm:$0xff] }
  0x38   :  { %137 = vmatpush1.msra.mxu0 %v94_v16  ;;  %543 = vmatpush3.msra.mxu1 %v326_v36  ;;  %v79_v45 = vld [vmem:[#allocation5 + $0x8] sm:$0xff]  ;;  %v323_v48 = vld [vmem:[#allocation7 + $0x40] sm:$0xff]  ;;  %v322_v51 = vld [vmem:[#allocation7 + $0x38] sm:$0xff] }
  0x39   :  { %138 = vmatprep.subr.mxu0 %v93_v17  ;;  %544 = vmatprep.subr.mxu1 %v341_v38  ;;  %v62_v49 = vld [vmem:[#allocation2] sm:$0xff]  ;;  %v337_v52 = vld [vmem:[#allocation7 + $0xb0] sm:$0xff]  ;;  %v63_v54 = vld [vmem:[#allocation2 + $0x8] sm:$0xff] }
  0x3a   :  { %139 = vmatpush1.msra.mxu0 %v92_v18  ;;  %545 = vmatpush3.msra.mxu1 %v325_v40  ;;  %v321_v53 = vld [vmem:[#allocation7 + $0x30] sm:$0xff]  ;;  %v336_v55 = vld [vmem:[#allocation7 + $0xa8] sm:$0xff]  ;;  %v335_v57 = vld [vmem:[#allocation7 + $0xa0] sm:$0xff]  ;;  %v112_v18 = vlaneseq }
  0x3b   :  { %140 = vmatprep.subr.mxu0 %v91_v19  ;;  %546 = vmatprep.subr.mxu1 %v340_v42  ;;  %v320_v56 = vld [vmem:[#allocation7 + $0x28] sm:$0xff]  ;;  %v319_v58 = vld [vmem:[#allocation7 + $0x20] sm:$0xff]  ;;  %v64_v59 = vld [vmem:[#allocation2 + $0x10] sm:$0xff] }
  0x3c   :  { %141 = vmatpush1.msra.mxu0 %v90_v23  ;;  %547 = vmatpush3.msra.mxu1 %v324_v44  ;;  %v65_v60 = vld [vmem:[#allocation2 + $0x18] sm:$0xff]  ;;  %v66_v61 = vld [vmem:[#allocation2 + $0x20] sm:$0xff]  ;;  %v67_v62 = vld [vmem:[#allocation2 + $0x28] sm:$0xff] }
  0x3d   :  { %142 = vmatprep.subr.mxu0 %v89_v25  ;;  %548 = vmatprep.subr.mxu1 %v339_v46  ;;  %v68_v63 = vld [vmem:[#allocation2 + $0x30] sm:$0xff]  ;;  %v69_v1 = vld [vmem:[#allocation2 + $0x38] sm:$0xff]  ;;  %v70_v2 = vld [vmem:[#allocation2 + $0x40] sm:$0xff] }
  0x3e   :  { %143 = vmatpush1.msra.mxu0 %v88_v27  ;;  %549 = vmatpush3.msra.mxu1 %v323_v48  ;;  %v71_v3 = vld [vmem:[#allocation2 + $0x48] sm:$0xff]  ;;  %v72_v4 = vld [vmem:[#allocation2 + $0x50] sm:$0xff]  ;;  %v73_v5 = vld [vmem:[#allocation2 + $0x58] sm:$0xff] }
  0x3f   :  { %144 = vmatprep.subr.mxu0 %v87_v29  ;;  %550 = vmatprep.subr.mxu1 %v338_v50  ;;  %v74_v6 = vld [vmem:[#allocation2 + $0x60] sm:$0xff]  ;;  %v75_v7 = vld [vmem:[#allocation2 + $0x68] sm:$0xff]  ;;  %v76_v8 = vld [vmem:[#allocation2 + $0x70] sm:$0xff] }
  0x40   :  { %145 = vmatpush1.msra.mxu0 %v86_v31  ;;  %551 = vmatpush3.msra.mxu1 %v322_v51  ;;  %v77_v9 = vld [vmem:[#allocation2 + $0x78] sm:$0xff]  ;;  %v333_v12 = vld [vmem:[#allocation7 + $0x90] sm:$0xff]  ;;  %v332_v14 = vld [vmem:[#allocation7 + $0x88] sm:$0xff] }
  0x41   :  { %146 = vmatprep.subr.mxu0 %v85_v33  ;;  %552 = vmatprep.subr.mxu1 %v337_v52  ;;  %v334_v10 = vld [vmem:[#allocation7 + $0x98] sm:$0xff]  ;;  %v317_v13 = vld [vmem:[#allocation7 + $0x10] sm:$0xff]  ;;  %v316_v15 = vld [vmem:[#allocation7 + $0x8] sm:$0xff] }
  0x42   :  { %147 = vmatpush1.msra.mxu0 %v84_v35  ;;  %553 = vmatpush3.msra.mxu1 %v321_v53  ;;  %v318_v11 = vld [vmem:[#allocation7 + $0x18] sm:$0xff]  ;;  %v331_v16 = vld [vmem:[#allocation7 + $0x80] sm:$0xff] }
  0x43   :  { %148 = vmatprep.subr.mxu0 %v83_v37  ;;  %554 = vmatprep.subr.mxu1 %v336_v55  ;;  %v315_v17 = vld [vmem:[#allocation7] sm:$0xff] }
  0x44   :  { %149 = vmatpush1.msra.mxu0 %v82_v39  ;;  %555 = vmatpush3.msra.mxu1 %v320_v56  ;;  %v110_v20 = vld [vmem:[%s847_s2] sm:$0x3] }
  0x45   :  { %150 = vmatprep.subr.mxu0 %v81_v41  ;;  %556 = vmatprep.subr.mxu1 %v335_v57 }
  0x46   :  { %151 = vmatpush1.msra.mxu0 %v80_v43  ;;  %557 = vmatpush3.msra.mxu1 %v319_v58 }
  0x47   :  { %152 = vmatprep.subr.mxu0 %v79_v45  ;;  %558 = vmatprep.subr.mxu1 %v334_v10 }
  0x48   :  { %153 = vmatpush1.msra.mxu0 %v78_v47  ;;  %559 = vmatpush3.msra.mxu1 %v318_v11 }
  0x49   :  { %187 = vmatmul.mubr.f32.vlgmr.msra.gmra.mxu0 %v62_v49  ;;  %560 = vmatprep.subr.mxu1 %v333_v12 }
  0x4a   :  { %192 = vmatprep.mubr.f32.mxu0 %v716_v0  ;;  %561 = vmatpush3.msra.mxu1 %v317_v13 }
  0x4b   :  { %562 = vmatprep.subr.mxu1 %v332_v14 }
  0x4c   :  { %563 = vmatpush3.msra.mxu1 %v316_v15 }
  0x4d   :  { %193 = vmatmul.mubr.f32.gmra.mxu0 %v63_v54  ;;  %564 = vmatprep.subr.mxu1 %v331_v16 }
  0x4e   :  { %198 = vmatprep.mubr.f32.mxu0 %v716_v0  ;;  %565 = vmatpush3.msra.mxu1 %v315_v17 }
  0x51   :  { %199 = vmatmul.mubr.f32.gmra.mxu0 %v64_v59 }
  0x52   :  { %204 = vmatprep.mubr.f32.mxu0 %v716_v0 }
  0x55   :  { %205 = vmatmul.mubr.f32.gmra.mxu0 %v65_v60 }
  0x56   :  { %210 = vmatprep.mubr.f32.mxu0 %v716_v0 }
  0x59   :  { %211 = vmatmul.mubr.f32.gmra.mxu0 %v66_v61 }
  0x5a   :  { %216 = vmatprep.mubr.f32.mxu0 %v716_v0 }
  0x5d   :  { %217 = vmatmul.mubr.f32.gmra.mxu0 %v67_v62 }
  0x5e   :  { %222 = vmatprep.mubr.f32.mxu0 %v716_v0 }
  0x61   :  { %223 = vmatmul.mubr.f32.gmra.mxu0 %v68_v63 }
  0x62   :  { %228 = vmatprep.mubr.f32.mxu0 %v716_v0 }
  0x65   :  { %229 = vmatmul.mubr.f32.gmra.mxu0 %v69_v1 }
  0x66   :  { %234 = vmatprep.mubr.f32.mxu0 %v716_v0 }
  0x69   :  { %235 = vmatmul.mubr.f32.gmra.mxu0 %v70_v2 }
  0x6a   :  { %240 = vmatprep.mubr.f32.mxu0 %v716_v0 }
  0x6d   :  { %241 = vmatmul.mubr.f32.gmra.mxu0 %v71_v3 }
  0x6e   :  { %246 = vmatprep.mubr.f32.mxu0 %v716_v0 }
  0x71   :  { %247 = vmatmul.mubr.f32.gmra.mxu0 %v72_v4 }
  0x72   :  { %252 = vmatprep.mubr.f32.mxu0 %v716_v0 }
  0x75   :  { %253 = vmatmul.mubr.f32.gmra.mxu0 %v73_v5 }
  0x76   :  { %258 = vmatprep.mubr.f32.mxu0 %v716_v0 }
  0x79   :  { %259 = vmatmul.mubr.f32.gmra.mxu0 %v74_v6 }
  0x7a   :  { %264 = vmatprep.mubr.f32.mxu0 %v716_v0 }
  0x7d   :  { %265 = vmatmul.mubr.f32.gmra.mxu0 %v75_v7 }
  0x7e   :  { %270 = vmatprep.mubr.f32.mxu0 %v716_v0 }
  0x81   :  { %271 = vmatmul.mubr.f32.gmra.mxu0 %v76_v8 }
  0x82   :  { %276 = vmatprep.mubr.f32.mxu0 %v716_v0  ;;  %v113_v0 = vshrl.u32 %v112_v18, 7 }
  0x84   :  { %v114_v19 = vsub.s32 0, %v113_v0  ;;  %v118_v21 = vsub.s32 1, %v113_v0 }
  0x85   :  { %277 = vmatmul.mubr.f32.gmra.mxu0 %v77_v9 }
  0x86   :  { %v782_v22 = vrot.slane %v110_v20, %v114_v19  ;;  %v784_v23 = vrot.slane %v110_v20, %v118_v21 }
 0x109   :  { %v188_v24 = vpop.f32.mrf.mxu0 }
 0x10a   :  { %v189_v25 = vadd.f32 %v188_v24, %v782_v22 }
 0x10b   :  { %v190_v26 = vpop.f32.mrf.mxu0 }
 0x10c   :  { %v191_v27 = vadd.f32 %v190_v26, %v784_v23  ;;  %v283_v30 = vmax.f32 %v189_v25, 0.0 }
 0x10d   :  { %v194_v28 = vpop.f32.mrf.mxu0 }
 0x10e   :  { %v284_v29 = vmax.f32 %v191_v27, 0.0  ;;  %v195_v31 = vadd.f32 %v194_v28, %v782_v22 }
 0x10f   :  { %v196_v32 = vpop.f32.mrf.mxu0 }
 0x110   :  { %v197_v33 = vadd.f32 %v196_v32, %v784_v23  ;;  %418 = vmatprep.mubr.f32.mxu1 %v284_v29  ;;  %v285_v36 = vmax.f32 %v195_v31, 0.0 }
 0x111   :  { %v200_v34 = vpop.f32.mrf.mxu0  ;;  %419 = vmatmul.mubr.f32.vlgmr.msra.gmra.mxu1 %v283_v30 }
 0x112   :  { %v286_v35 = vmax.f32 %v197_v33, 0.0  ;;  %v201_v37 = vadd.f32 %v200_v34, %v782_v22 }
 0x113   :  { %v202_v38 = vpop.f32.mrf.mxu0 }
 0x114   :  { %v203_v39 = vadd.f32 %v202_v38, %v784_v23  ;;  %423 = vmatprep.mubr.f32.mxu1 %v286_v35  ;;  %v287_v42 = vmax.f32 %v201_v37, 0.0 }
 0x115   :  { %v206_v40 = vpop.f32.mrf.mxu0  ;;  %424 = vmatmul.mubr.f32.gmra.mxu1 %v285_v36 }
 0x116   :  { %v288_v41 = vmax.f32 %v203_v39, 0.0  ;;  %v207_v43 = vadd.f32 %v206_v40, %v782_v22 }
 0x117   :  { %v208_v44 = vpop.f32.mrf.mxu0 }
 0x118   :  { %v209_v45 = vadd.f32 %v208_v44, %v784_v23  ;;  %428 = vmatprep.mubr.f32.mxu1 %v288_v41  ;;  %v289_v48 = vmax.f32 %v207_v43, 0.0 }
 0x119   :  { %v212_v46 = vpop.f32.mrf.mxu0  ;;  %429 = vmatmul.mubr.f32.gmra.mxu1 %v287_v42 }
 0x11a   :  { %v290_v47 = vmax.f32 %v209_v45, 0.0  ;;  %v213_v49 = vadd.f32 %v212_v46, %v782_v22 }
 0x11b   :  { %v214_v50 = vpop.f32.mrf.mxu0 }
 0x11c   :  { %v215_v51 = vadd.f32 %v214_v50, %v784_v23  ;;  %433 = vmatprep.mubr.f32.mxu1 %v290_v47  ;;  %v291_v54 = vmax.f32 %v213_v49, 0.0 }
 0x11d   :  { %v218_v52 = vpop.f32.mrf.mxu0  ;;  %434 = vmatmul.mubr.f32.gmra.mxu1 %v289_v48 }
 0x11e   :  { %v292_v53 = vmax.f32 %v215_v51, 0.0  ;;  %v219_v55 = vadd.f32 %v218_v52, %v782_v22 }
 0x11f   :  { %v220_v56 = vpop.f32.mrf.mxu0 }
 0x120   :  { %v221_v57 = vadd.f32 %v220_v56, %v784_v23  ;;  %438 = vmatprep.mubr.f32.mxu1 %v292_v53  ;;  %v293_v60 = vmax.f32 %v219_v55, 0.0 }
 0x121   :  { %v224_v58 = vpop.f32.mrf.mxu0  ;;  %439 = vmatmul.mubr.f32.gmra.mxu1 %v291_v54 }
 0x122   :  { %v294_v59 = vmax.f32 %v221_v57, 0.0  ;;  %v225_v61 = vadd.f32 %v224_v58, %v782_v22 }
 0x123   :  { %v226_v62 = vpop.f32.mrf.mxu0 }
 0x124   :  { %v227_v63 = vadd.f32 %v226_v62, %v784_v23  ;;  %443 = vmatprep.mubr.f32.mxu1 %v294_v59  ;;  %v295_v3 = vmax.f32 %v225_v61, 0.0  ;;  %v821_v59 = vld [vmem:[%s849_s4] ss:$0 sm:$0xff]  ;;  %s717_s4 = smov [#allocation8]  }
 0x125   :  { %v230_v1 = vpop.f32.mrf.mxu0  ;;  %444 = vmatmul.mubr.f32.gmra.mxu1 %v293_v60  ;;  %s520_s12 = sshll.u32 %s717_s4, 4  ;;  %s521_s12 = int_to_ptr.vmem [resolvable:$true] %s520_s12 }
 0x126   :  { %v296_v2 = vmax.f32 %v227_v63, 0.0  ;;  %v231_v4 = vadd.f32 %v230_v1, %v782_v22  ;;  %s683_s13 = scalar_lea.vmem %s521_s12, 2048  ;;  %p688_p2 = scmp.lt.s32.totalorder %s521_s12, %s521_s12 }
 0x127   :  { %v232_v5 = vpop.f32.mrf.mxu0  ;;  %p684_p1 = scmp.ne.s32.totalorder %s521_s12, %s683_s13  ;;  %p689_p3 = scmp.lt.s32.totalorder %s683_s13, %s683_s13 }
 0x128   :  { %v233_v6 = vadd.f32 %v232_v5, %v784_v23  ;;  %448 = vmatprep.mubr.f32.mxu1 %v296_v2  ;;  %v297_v9 = vmax.f32 %v231_v4, 0.0 }
 0x129   :  { %v236_v7 = vpop.f32.mrf.mxu0  ;;  %449 = vmatmul.mubr.f32.gmra.mxu1 %v295_v3  ;;  %p690_p4 = por %p689_p3, %p688_p2 }
 0x12a   :  { %v298_v8 = vmax.f32 %v233_v6, 0.0  ;;  %v237_v10 = vadd.f32 %v236_v7, %v782_v22 }
 0x12b   :  { %v238_v11 = vpop.f32.mrf.mxu0  ;;  %p691_p5 = pnand %p690_p4, %p684_p1 }
 0x12c   :  { %v239_v12 = vadd.f32 %v238_v11, %v784_v23  ;;  %453 = vmatprep.mubr.f32.mxu1 %v298_v8  ;;  %v299_v15 = vmax.f32 %v237_v10, 0.0 }
 0x12d   :  { %v242_v13 = vpop.f32.mrf.mxu0  ;;  %454 = vmatmul.mubr.f32.gmra.mxu1 %v297_v9 }
 0x12e   :  { %v300_v14 = vmax.f32 %v239_v12, 0.0  ;;  %v243_v16 = vadd.f32 %v242_v13, %v782_v22 }
 0x12f   :  { %v244_v17 = vpop.f32.mrf.mxu0 }
 0x130   :  { %v245_v18 = vadd.f32 %v244_v17, %v784_v23  ;;  %458 = vmatprep.mubr.f32.mxu1 %v300_v14  ;;  %v301_v20 = vmax.f32 %v243_v16, 0.0 }
 0x131   :  { %v248_v0 = vpop.f32.mrf.mxu0  ;;  %459 = vmatmul.mubr.f32.gmra.mxu1 %v299_v15 }
 0x132   :  { %v302_v19 = vmax.f32 %v245_v18, 0.0  ;;  %v249_v21 = vadd.f32 %v248_v0, %v782_v22 }
 0x133   :  { %v250_v24 = vpop.f32.mrf.mxu0 }
 0x134   :  { %v251_v25 = vadd.f32 %v250_v24, %v784_v23  ;;  %463 = vmatprep.mubr.f32.mxu1 %v302_v19  ;;  %v303_v28 = vmax.f32 %v249_v21, 0.0 }
 0x135   :  { %v254_v26 = vpop.f32.mrf.mxu0  ;;  %464 = vmatmul.mubr.f32.gmra.mxu1 %v301_v20 }
 0x136   :  { %v304_v27 = vmax.f32 %v251_v25, 0.0  ;;  %v255_v29 = vadd.f32 %v254_v26, %v782_v22 }
 0x137   :  { %v256_v30 = vpop.f32.mrf.mxu0 }
 0x138   :  { %v257_v31 = vadd.f32 %v256_v30, %v784_v23  ;;  %468 = vmatprep.mubr.f32.mxu1 %v304_v27  ;;  %v305_v34 = vmax.f32 %v255_v29, 0.0 }
 0x139   :  { %v260_v32 = vpop.f32.mrf.mxu0  ;;  %469 = vmatmul.mubr.f32.gmra.mxu1 %v303_v28 }
 0x13a   :  { %v306_v33 = vmax.f32 %v257_v31, 0.0  ;;  %v261_v35 = vadd.f32 %v260_v32, %v782_v22 }
 0x13b   :  { %v262_v36 = vpop.f32.mrf.mxu0 }
 0x13c   :  { %v263_v37 = vadd.f32 %v262_v36, %v784_v23  ;;  %473 = vmatprep.mubr.f32.mxu1 %v306_v33  ;;  %v307_v40 = vmax.f32 %v261_v35, 0.0 }
 0x13d   :  { %v266_v38 = vpop.f32.mrf.mxu0  ;;  %474 = vmatmul.mubr.f32.gmra.mxu1 %v305_v34 }
 0x13e   :  { %v308_v39 = vmax.f32 %v263_v37, 0.0  ;;  %v267_v41 = vadd.f32 %v266_v38, %v782_v22 }
 0x13f   :  { %v268_v42 = vpop.f32.mrf.mxu0 }
 0x140   :  { %v269_v43 = vadd.f32 %v268_v42, %v784_v23  ;;  %478 = vmatprep.mubr.f32.mxu1 %v308_v39  ;;  %v309_v46 = vmax.f32 %v267_v41, 0.0 }
 0x141   :  { %v272_v44 = vpop.f32.mrf.mxu0  ;;  %479 = vmatmul.mubr.f32.gmra.mxu1 %v307_v40 }
 0x142   :  { %v310_v45 = vmax.f32 %v269_v43, 0.0  ;;  %v273_v47 = vadd.f32 %v272_v44, %v782_v22 }
 0x143   :  { %v274_v48 = vpop.f32.mrf.mxu0 }
 0x144   :  { %v275_v49 = vadd.f32 %v274_v48, %v784_v23  ;;  %483 = vmatprep.mubr.f32.mxu1 %v310_v45  ;;  %v311_v52 = vmax.f32 %v273_v47, 0.0 }
 0x145   :  { %v278_v50 = vpop.f32.mrf.mxu0  ;;  %484 = vmatmul.mubr.f32.gmra.mxu1 %v309_v46 }
 0x146   :  { %v312_v51 = vmax.f32 %v275_v49, 0.0  ;;  %v279_v53 = vadd.f32 %v278_v50, %v782_v22 }
 0x147   :  { %v280_v54 = vpop.f32.mrf.mxu0 }
 0x148   :  { %v281_v55 = vadd.f32 %v280_v54, %v784_v23  ;;  %488 = vmatprep.mubr.f32.mxu1 %v312_v51  ;;  %v313_v57 = vmax.f32 %v279_v53, 0.0 }
 0x149   :  { %489 = vmatmul.mubr.f32.gmra.mxu1 %v311_v52 }
 0x14a   :  { %v314_v56 = vmax.f32 %v281_v55, 0.0 }
 0x14c   :  { %493 = vmatprep.mubr.f32.mxu1 %v314_v56 }
 0x14d   :  { %494 = vmatmul.mubr.f32.gmra.mxu1 %v313_v57 }
 0x1d1   :  { %v566_v58 = vpop.f32.mrf.mxu1 }
 0x1d3   :  { %v567_v60 = vpop.f32.mrf.mxu1 }
 0x1d4   :  { %v568_v61 = vadd.f32 %v567_v60, %v566_v58 }
 0x1d5   :  { %v569_v62 = vpop.f32.mrf.mxu1 }
 0x1d6   :  { %v421_v22 = vadd.f32 %v568_v61, %v821_v59 }
 0x1d7   :  { %v570_v63 = vpop.f32.mrf.mxu1 }
 0x1d8   :  { %499 = vst [vmem:[#allocation8] sm:$0xff] %v421_v22  ;;  %v571_v23 = vadd.f32 %v570_v63, %v569_v62 }
 0x1d9   :  { %v572_v1 = vpop.f32.mrf.mxu1 }
 0x1da   :  { %v426_v2 = vadd.f32 %v571_v23, %v821_v59 }
 0x1db   :  { %v573_v3 = vpop.f32.mrf.mxu1 }
 0x1dc   :  { %500 = vst [vmem:[#allocation8 + $0x8] sm:$0xff] %v426_v2  ;;  %v574_v4 = vadd.f32 %v573_v3, %v572_v1 }
 0x1dd   :  { %v575_v5 = vpop.f32.mrf.mxu1 }
 0x1de   :  { %v431_v6 = vadd.f32 %v574_v4, %v821_v59 }
 0x1df   :  { %v576_v7 = vpop.f32.mrf.mxu1 }
 0x1e0   :  { %501 = vst [vmem:[#allocation8 + $0x10] sm:$0xff] %v431_v6  ;;  %v577_v8 = vadd.f32 %v576_v7, %v575_v5 }
 0x1e1   :  { %v578_v9 = vpop.f32.mrf.mxu1 }
 0x1e2   :  { %v436_v10 = vadd.f32 %v577_v8, %v821_v59 }
 0x1e3   :  { %v579_v11 = vpop.f32.mrf.mxu1 }
 0x1e4   :  { %502 = vst [vmem:[#allocation8 + $0x18] sm:$0xff] %v436_v10  ;;  %v580_v12 = vadd.f32 %v579_v11, %v578_v9 }
 0x1e5   :  { %v581_v13 = vpop.f32.mrf.mxu1 }
 0x1e6   :  { %v441_v14 = vadd.f32 %v580_v12, %v821_v59 }
 0x1e7   :  { %v582_v15 = vpop.f32.mrf.mxu1 }
 0x1e8   :  { %503 = vst [vmem:[#allocation8 + $0x20] sm:$0xff] %v441_v14  ;;  %v583_v16 = vadd.f32 %v582_v15, %v581_v13 }
 0x1e9   :  { %v584_v17 = vpop.f32.mrf.mxu1 }
 0x1ea   :  { %v446_v18 = vadd.f32 %v583_v16, %v821_v59 }
 0x1eb   :  { %v585_v0 = vpop.f32.mrf.mxu1 }
 0x1ec   :  { %504 = vst [vmem:[#allocation8 + $0x28] sm:$0xff] %v446_v18  ;;  %v586_v19 = vadd.f32 %v585_v0, %v584_v17 }
 0x1ed   :  { %v587_v20 = vpop.f32.mrf.mxu1 }
 0x1ee   :  { %v451_v21 = vadd.f32 %v586_v19, %v821_v59 }
 0x1ef   :  { %v588_v24 = vpop.f32.mrf.mxu1 }
 0x1f0   :  { %505 = vst [vmem:[#allocation8 + $0x30] sm:$0xff] %v451_v21  ;;  %v589_v25 = vadd.f32 %v588_v24, %v587_v20 }
 0x1f1   :  { %v590_v26 = vpop.f32.mrf.mxu1 }
 0x1f2   :  { %v456_v27 = vadd.f32 %v589_v25, %v821_v59 }
 0x1f3   :  { %v591_v28 = vpop.f32.mrf.mxu1 }
 0x1f4   :  { %506 = vst [vmem:[#allocation8 + $0x38] sm:$0xff] %v456_v27  ;;  %v592_v29 = vadd.f32 %v591_v28, %v590_v26 }
 0x1f5   :  { %v593_v30 = vpop.f32.mrf.mxu1 }
 0x1f6   :  { %v461_v31 = vadd.f32 %v592_v29, %v821_v59 }
 0x1f7   :  { %v594_v32 = vpop.f32.mrf.mxu1 }
 0x1f8   :  { %507 = vst [vmem:[#allocation8 + $0x40] sm:$0xff] %v461_v31  ;;  %v595_v33 = vadd.f32 %v594_v32, %v593_v30 }
 0x1f9   :  { %v596_v34 = vpop.f32.mrf.mxu1 }
 0x1fa   :  { %v466_v35 = vadd.f32 %v595_v33, %v821_v59 }
 0x1fb   :  { %v597_v36 = vpop.f32.mrf.mxu1 }
 0x1fc   :  { %508 = vst [vmem:[#allocation8 + $0x48] sm:$0xff] %v466_v35  ;;  %v598_v37 = vadd.f32 %v597_v36, %v596_v34 }
 0x1fd   :  { %v599_v38 = vpop.f32.mrf.mxu1 }
 0x1fe   :  { %v471_v39 = vadd.f32 %v598_v37, %v821_v59 }
 0x1ff   :  { %v600_v40 = vpop.f32.mrf.mxu1 }
 0x200   :  { %509 = vst [vmem:[#allocation8 + $0x50] sm:$0xff] %v471_v39  ;;  %v601_v41 = vadd.f32 %v600_v40, %v599_v38 }
 0x201   :  { %v602_v42 = vpop.f32.mrf.mxu1 }
 0x202   :  { %v476_v43 = vadd.f32 %v601_v41, %v821_v59 }
 0x203   :  { %v603_v44 = vpop.f32.mrf.mxu1 }
 0x204   :  { %510 = vst [vmem:[#allocation8 + $0x58] sm:$0xff] %v476_v43  ;;  %v604_v45 = vadd.f32 %v603_v44, %v602_v42 }
 0x205   :  { %v605_v46 = vpop.f32.mrf.mxu1 }
 0x206   :  { %v481_v47 = vadd.f32 %v604_v45, %v821_v59 }
 0x207   :  { %v606_v48 = vpop.f32.mrf.mxu1 }
 0x208   :  { %511 = vst [vmem:[#allocation8 + $0x60] sm:$0xff] %v481_v47  ;;  %v607_v49 = vadd.f32 %v606_v48, %v605_v46 }
 0x209   :  { %v608_v50 = vpop.f32.mrf.mxu1 }
 0x20a   :  { %v486_v51 = vadd.f32 %v607_v49, %v821_v59 }
 0x20b   :  { %v609_v52 = vpop.f32.mrf.mxu1 }
 0x20c   :  { %512 = vst [vmem:[#allocation8 + $0x68] sm:$0xff] %v486_v51  ;;  %v610_v53 = vadd.f32 %v609_v52, %v608_v50 }
 0x20d   :  { %v611_v54 = vpop.f32.mrf.mxu1 }
 0x20e   :  { %v491_v55 = vadd.f32 %v610_v53, %v821_v59 }
 0x20f   :  { %v612_v56 = vpop.f32.mrf.mxu1 }
 0x210   :  { %513 = vst [vmem:[#allocation8 + $0x70] sm:$0xff] %v491_v55  ;;  %v613_v57 = vadd.f32 %v612_v56, %v611_v54 }
 0x212   :  { %v496_v58 = vadd.f32 %v613_v57, %v821_v59 }
 0x214   :  { %514 = vst [vmem:[#allocation8 + $0x78] sm:$0xff] %v496_v58 }
 0x215   :  { %694 = shalt.err (!%p691_p5)
}
 0x216   :  { %526 = dma.vmem_to_hbm [thread:$0]  %s521_s12, 2048, %s850_s5, [#allocation4], %s713_s28, %s713_s28, %s714_s29  }
 0x217   :  { %707 = dma.done.wait [#allocation4], 2048  }
 0x218   :  { %708 = vsyncadd [#allocation4], 4294965248 }
 0x219   :  { %530 = vsyncpa [#allocation3], 1 }
 0x21a   :  { %531 = vsyncpa [#allocation6], 1 }
 0x21b   :  { %532 = vsyncpa [#allocation4], 1 }

</bundles_post_ra>
